<compile_context>
chip_gen: v7x
topology: tpu7x:2x2x1
jax: 0.10.0
libtpu: 0.0.40
codegen_flags: <defaults>
</compile_context>

<pallas_src>
import jax
import jax.numpy as jnp
from jax.experimental import pallas as pl
from jax.experimental.pallas import tpu as pltpu


def _round_up(n, m):
    return ((n + m - 1) // m) * m


def discriminator_kernel(xT_ref, w1_ref, b1_ref, w2_ref, b2_ref, o_ref):
    """One batch tile.

    xT_ref : (4, T) f32 in VMEM  -- features on sublanes, batch on lanes.
    w1_ref : (4, 3) f32 in SMEM, b1_ref: (3,), w2_ref: (3,), b2_ref: (1,).
    o_ref  : (1, T) f32 in VMEM  -- lane-dense output slab.
    """
    x = xT_ref[...]                                   # (4, T)
    T = x.shape[1]

    # Layer-2 accumulator, initialized with the output bias.
    y = jnp.full((1, T), b2_ref[0], dtype=jnp.float32)

    # 3 hidden units, fully unrolled: h_j = sigmoid(sum_k w1[k,j]*x[k] + b1[j])
    # then y += w2[j] * h_j.  Pure VPU broadcast-FMA + EUP sigmoid, no MXU.
    for j in range(3):
        h = (w1_ref[0, j] * x[0:1, :]
             + w1_ref[1, j] * x[1:2, :]
             + w1_ref[2, j] * x[2:3, :]
             + w1_ref[3, j] * x[3:4, :]
             + b1_ref[j])
        y = y + w2_ref[j] * jax.nn.sigmoid(h)

    o_ref[...] = jax.nn.sigmoid(y)


def discriminator_forward(x, w1, b1, w2, b2, *, tile_b=512):
    """x: (B, 4) f32.  Returns (B, 1) f32 = sigmoid(sigmoid(x@W1+b1)@W2+b2),
    matching PyTorch nn.Linear(4,3)->Sigmoid->nn.Linear(3,1)->Sigmoid with
    weights stored pre-transposed as (in_features, out_features)."""
    B = x.shape[0]

    # Canonical SMEM parameter shapes.
    w1 = w1.reshape(4, 3).astype(jnp.float32)
    b1 = b1.reshape(3).astype(jnp.float32)
    w2 = w2.reshape(3).astype(jnp.float32)
    b2 = b2.reshape(1).astype(jnp.float32)

    # Batch on the lane axis; pad batch to a lane-dense tile multiple.
    tile_b = min(tile_b, _round_up(B, 128))
    tile_b = _round_up(tile_b, 128)
    Bp = _round_up(B, tile_b)

    xT = x.astype(jnp.float32).T                      # (4, B) layout plumbing
    if Bp != B:
        xT = jnp.pad(xT, ((0, 0), (0, Bp - B)))

    grid = (Bp // tile_b,)

    out = pl.pallas_call(
        discriminator_kernel,
        out_shape=jax.ShapeDtypeStruct((1, Bp), jnp.float32),
        grid=grid,
        in_specs=[
            # batch-tiled, lane-dense input block (double-buffered by Pallas)
            pl.BlockSpec((4, tile_b), lambda i: (0, i)),
            # tiny parameters: untiled, resident in SMEM, read as scalars
            pl.BlockSpec(memory_space=pltpu.MemorySpace.SMEM),   # w1 (4, 3)
            pl.BlockSpec(memory_space=pltpu.MemorySpace.SMEM),   # b1 (3,)
            pl.BlockSpec(memory_space=pltpu.MemorySpace.SMEM),   # w2 (3,)
            pl.BlockSpec(memory_space=pltpu.MemorySpace.SMEM),   # b2 (1,)
        ],
        # lane-dense (1, TILE_B) output slab -> unmasked vector stores
        out_specs=pl.BlockSpec((1, tile_b), lambda i: (0, i)),
        compiler_params=pltpu.CompilerParams(
            dimension_semantics=("parallel",)),      # megacore/v7x 2-TC shard
        cost_estimate=pl.CostEstimate(
            flops=30 * Bp,
            transcendentals=4 * Bp,
            bytes_accessed=20 * Bp),
    )(xT, w1, b1, w2, b2)

    return out[0, :B].reshape(B, 1)


def init_params(key):
    """Deterministic init mirroring PyTorch nn.Linear default
    (U[-1/sqrt(fan_in), +1/sqrt(fan_in)]); weights stored as (in, out)."""
    k1, k2, k3, k4 = jax.random.split(key, 4)
    bound1 = 1.0 / jnp.sqrt(4.0)
    bound2 = 1.0 / jnp.sqrt(3.0)
    w1 = jax.random.uniform(k1, (4, 3), jnp.float32, -bound1, bound1)
    b1 = jax.random.uniform(k2, (3,), jnp.float32, -bound1, bound1)
    w2 = jax.random.uniform(k3, (3, 1), jnp.float32, -bound2, bound2)
    b2 = jax.random.uniform(k4, (1,), jnp.float32, -bound2, bound2)
    return w1, b1, w2, b2


if __name__ == "__main__":
    key = jax.random.PRNGKey(0)
    k_params, k_x = jax.random.split(key)

    w1, b1, w2, b2 = init_params(k_params)

    # Small batch of 1024 samples, 4 features each (matches Linear(4, 3));
    # tile_b=256 gives a 4-step batch grid to exercise the pipeline.
    B = 1024
    x = jax.random.uniform(k_x, (B, 4), jnp.float32)

    out = discriminator_forward(x, w1, b1, w2, b2, tile_b=256)
    out = jax.block_until_ready(out)

    # Sanity check against a pure-JAX reference of the same computation.
    ref = jax.nn.sigmoid(jax.nn.sigmoid(x @ w1 + b1) @ w2 + b2)
    assert out.shape == (B, 1)
    assert jnp.allclose(out, ref, atol=1e-5), "mismatch vs reference"

    print("KERNEL_OK")
</pallas_src>

<mosaic_0001>
module attributes {stable_mosaic.version = 11 : i64} {
  func.func @discriminator_kernel(%arg0: i32, %arg1: memref<4x256xf32, #tpu.memory_space<vmem>>, %arg2: memref<4x3xf32, #tpu.memory_space<smem>>, %arg3: memref<3xf32, #tpu.memory_space<smem>>, %arg4: memref<3xf32, #tpu.memory_space<smem>>, %arg5: memref<1xf32, #tpu.memory_space<smem>>, %arg6: memref<1x256xf32, #tpu.memory_space<vmem>>) attributes {dimension_semantics = [#tpu.dimension_semantics<parallel>], iteration_bounds = array<i64: 4>, scalar_prefetch = 0 : i64, scratch_operands = 0 : i64, tpu.core_type = #tpu.core_type<tc>, window_params = [{transform_indices = @transform_0, window_bounds = array<i64: 4, 256>}, {transform_indices = @transform_1, window_bounds = array<i64: 4, 3>}, {transform_indices = @transform_2, window_bounds = array<i64: 3>}, {transform_indices = @transform_3, window_bounds = array<i64: 3>}, {transform_indices = @transform_4, window_bounds = array<i64: 1>}, {transform_indices = @transform_5, window_bounds = array<i64: 1, 256>}]} {
    %c0 = arith.constant 0 : index
    %c0_0 = arith.constant 0 : index
    %0 = vector.load %arg1[%c0, %c0_0] : memref<4x256xf32, #tpu.memory_space<vmem>>, vector<4x256xf32>
    %c0_1 = arith.constant 0 : index
    %1 = memref.load %arg5[%c0_1] : memref<1xf32, #tpu.memory_space<smem>>
    %2 = vector.broadcast %1 : f32 to vector<1x256xf32>
    %c0_2 = arith.constant 0 : index
    %c0_3 = arith.constant 0 : index
    %3 = memref.load %arg2[%c0_2, %c0_3] : memref<4x3xf32, #tpu.memory_space<smem>>
    %4 = vector.extract_strided_slice %0 {offsets = [0, 0], sizes = [1, 256], strides = [1, 1]} : vector<4x256xf32> to vector<1x256xf32>
    %5 = vector.broadcast %3 : f32 to vector<1x256xf32>
    %6 = arith.mulf %5, %4 : vector<1x256xf32>
    %c1 = arith.constant 1 : index
    %c0_4 = arith.constant 0 : index
    %7 = memref.load %arg2[%c1, %c0_4] : memref<4x3xf32, #tpu.memory_space<smem>>
    %8 = vector.extract_strided_slice %0 {offsets = [1, 0], sizes = [1, 256], strides = [1, 1]} : vector<4x256xf32> to vector<1x256xf32>
    %9 = vector.broadcast %7 : f32 to vector<1x256xf32>
    %10 = arith.mulf %9, %8 : vector<1x256xf32>
    %11 = arith.addf %6, %10 : vector<1x256xf32>
    %c2 = arith.constant 2 : index
    %c0_5 = arith.constant 0 : index
    %12 = memref.load %arg2[%c2, %c0_5] : memref<4x3xf32, #tpu.memory_space<smem>>
    %13 = vector.extract_strided_slice %0 {offsets = [2, 0], sizes = [1, 256], strides = [1, 1]} : vector<4x256xf32> to vector<1x256xf32>
    %14 = vector.broadcast %12 : f32 to vector<1x256xf32>
    %15 = arith.mulf %14, %13 : vector<1x256xf32>
    %16 = arith.addf %11, %15 : vector<1x256xf32>
    %c3 = arith.constant 3 : index
    %c0_6 = arith.constant 0 : index
    %17 = memref.load %arg2[%c3, %c0_6] : memref<4x3xf32, #tpu.memory_space<smem>>
    %18 = vector.extract_strided_slice %0 {offsets = [3, 0], sizes = [1, 256], strides = [1, 1]} : vector<4x256xf32> to vector<1x256xf32>
    %19 = vector.broadcast %17 : f32 to vector<1x256xf32>
    %20 = arith.mulf %19, %18 : vector<1x256xf32>
    %21 = arith.addf %16, %20 : vector<1x256xf32>
    %c0_7 = arith.constant 0 : index
    %22 = memref.load %arg3[%c0_7] : memref<3xf32, #tpu.memory_space<smem>>
    %23 = vector.broadcast %22 : f32 to vector<1x256xf32>
    %24 = arith.addf %21, %23 : vector<1x256xf32>
    %c0_8 = arith.constant 0 : index
    %25 = memref.load %arg4[%c0_8] : memref<3xf32, #tpu.memory_space<smem>>
    %26 = arith.negf %24 : vector<1x256xf32>
    %27 = math.exp %26 : vector<1x256xf32>
    %cst = arith.constant 1.000000e+00 : f32
    %28 = vector.broadcast %cst : f32 to vector<1x256xf32>
    %29 = arith.addf %28, %27 : vector<1x256xf32>
    %30 = arith.divf %28, %29 : vector<1x256xf32>
    %31 = vector.broadcast %25 : f32 to vector<1x256xf32>
    %32 = arith.mulf %31, %30 : vector<1x256xf32>
    %33 = arith.addf %2, %32 : vector<1x256xf32>
    %c0_9 = arith.constant 0 : index
    %c1_10 = arith.constant 1 : index
    %34 = memref.load %arg2[%c0_9, %c1_10] : memref<4x3xf32, #tpu.memory_space<smem>>
    %35 = vector.extract_strided_slice %0 {offsets = [0, 0], sizes = [1, 256], strides = [1, 1]} : vector<4x256xf32> to vector<1x256xf32>
    %36 = vector.broadcast %34 : f32 to vector<1x256xf32>
    %37 = arith.mulf %36, %35 : vector<1x256xf32>
    %c1_11 = arith.constant 1 : index
    %c1_12 = arith.constant 1 : index
    %38 = memref.load %arg2[%c1_11, %c1_12] : memref<4x3xf32, #tpu.memory_space<smem>>
    %39 = vector.extract_strided_slice %0 {offsets = [1, 0], sizes = [1, 256], strides = [1, 1]} : vector<4x256xf32> to vector<1x256xf32>
    %40 = vector.broadcast %38 : f32 to vector<1x256xf32>
    %41 = arith.mulf %40, %39 : vector<1x256xf32>
    %42 = arith.addf %37, %41 : vector<1x256xf32>
    %c2_13 = arith.constant 2 : index
    %c1_14 = arith.constant 1 : index
    %43 = memref.load %arg2[%c2_13, %c1_14] : memref<4x3xf32, #tpu.memory_space<smem>>
    %44 = vector.extract_strided_slice %0 {offsets = [2, 0], sizes = [1, 256], strides = [1, 1]} : vector<4x256xf32> to vector<1x256xf32>
    %45 = vector.broadcast %43 : f32 to vector<1x256xf32>
    %46 = arith.mulf %45, %44 : vector<1x256xf32>
    %47 = arith.addf %42, %46 : vector<1x256xf32>
    %c3_15 = arith.constant 3 : index
    %c1_16 = arith.constant 1 : index
    %48 = memref.load %arg2[%c3_15, %c1_16] : memref<4x3xf32, #tpu.memory_space<smem>>
    %49 = vector.extract_strided_slice %0 {offsets = [3, 0], sizes = [1, 256], strides = [1, 1]} : vector<4x256xf32> to vector<1x256xf32>
    %50 = vector.broadcast %48 : f32 to vector<1x256xf32>
    %51 = arith.mulf %50, %49 : vector<1x256xf32>
    %52 = arith.addf %47, %51 : vector<1x256xf32>
    %c1_17 = arith.constant 1 : index
    %53 = memref.load %arg3[%c1_17] : memref<3xf32, #tpu.memory_space<smem>>
    %54 = vector.broadcast %53 : f32 to vector<1x256xf32>
    %55 = arith.addf %52, %54 : vector<1x256xf32>
    %c1_18 = arith.constant 1 : index
    %56 = memref.load %arg4[%c1_18] : memref<3xf32, #tpu.memory_space<smem>>
    %57 = arith.negf %55 : vector<1x256xf32>
    %58 = math.exp %57 : vector<1x256xf32>
    %cst_19 = arith.constant 1.000000e+00 : f32
    %59 = vector.broadcast %cst_19 : f32 to vector<1x256xf32>
    %60 = arith.addf %59, %58 : vector<1x256xf32>
    %61 = arith.divf %59, %60 : vector<1x256xf32>
    %62 = vector.broadcast %56 : f32 to vector<1x256xf32>
    %63 = arith.mulf %62, %61 : vector<1x256xf32>
    %64 = arith.addf %33, %63 : vector<1x256xf32>
    %c0_20 = arith.constant 0 : index
    %c2_21 = arith.constant 2 : index
    %65 = memref.load %arg2[%c0_20, %c2_21] : memref<4x3xf32, #tpu.memory_space<smem>>
    %66 = vector.extract_strided_slice %0 {offsets = [0, 0], sizes = [1, 256], strides = [1, 1]} : vector<4x256xf32> to vector<1x256xf32>
    %67 = vector.broadcast %65 : f32 to vector<1x256xf32>
    %68 = arith.mulf %67, %66 : vector<1x256xf32>
    %c1_22 = arith.constant 1 : index
    %c2_23 = arith.constant 2 : index
    %69 = memref.load %arg2[%c1_22, %c2_23] : memref<4x3xf32, #tpu.memory_space<smem>>
    %70 = vector.extract_strided_slice %0 {offsets = [1, 0], sizes = [1, 256], strides = [1, 1]} : vector<4x256xf32> to vector<1x256xf32>
    %71 = vector.broadcast %69 : f32 to vector<1x256xf32>
    %72 = arith.mulf %71, %70 : vector<1x256xf32>
    %73 = arith.addf %68, %72 : vector<1x256xf32>
    %c2_24 = arith.constant 2 : index
    %c2_25 = arith.constant 2 : index
    %74 = memref.load %arg2[%c2_24, %c2_25] : memref<4x3xf32, #tpu.memory_space<smem>>
    %75 = vector.extract_strided_slice %0 {offsets = [2, 0], sizes = [1, 256], strides = [1, 1]} : vector<4x256xf32> to vector<1x256xf32>
    %76 = vector.broadcast %74 : f32 to vector<1x256xf32>
    %77 = arith.mulf %76, %75 : vector<1x256xf32>
    %78 = arith.addf %73, %77 : vector<1x256xf32>
    %c3_26 = arith.constant 3 : index
    %c2_27 = arith.constant 2 : index
    %79 = memref.load %arg2[%c3_26, %c2_27] : memref<4x3xf32, #tpu.memory_space<smem>>
    %80 = vector.extract_strided_slice %0 {offsets = [3, 0], sizes = [1, 256], strides = [1, 1]} : vector<4x256xf32> to vector<1x256xf32>
    %81 = vector.broadcast %79 : f32 to vector<1x256xf32>
    %82 = arith.mulf %81, %80 : vector<1x256xf32>
    %83 = arith.addf %78, %82 : vector<1x256xf32>
    %c2_28 = arith.constant 2 : index
    %84 = memref.load %arg3[%c2_28] : memref<3xf32, #tpu.memory_space<smem>>
    %85 = vector.broadcast %84 : f32 to vector<1x256xf32>
    %86 = arith.addf %83, %85 : vector<1x256xf32>
    %c2_29 = arith.constant 2 : index
    %87 = memref.load %arg4[%c2_29] : memref<3xf32, #tpu.memory_space<smem>>
    %88 = arith.negf %86 : vector<1x256xf32>
    %89 = math.exp %88 : vector<1x256xf32>
    %cst_30 = arith.constant 1.000000e+00 : f32
    %90 = vector.broadcast %cst_30 : f32 to vector<1x256xf32>
    %91 = arith.addf %90, %89 : vector<1x256xf32>
    %92 = arith.divf %90, %91 : vector<1x256xf32>
    %93 = vector.broadcast %87 : f32 to vector<1x256xf32>
    %94 = arith.mulf %93, %92 : vector<1x256xf32>
    %95 = arith.addf %64, %94 : vector<1x256xf32>
    %96 = arith.negf %95 : vector<1x256xf32>
    %97 = math.exp %96 : vector<1x256xf32>
    %cst_31 = arith.constant 1.000000e+00 : f32
    %98 = vector.broadcast %cst_31 : f32 to vector<1x256xf32>
    %99 = arith.addf %98, %97 : vector<1x256xf32>
    %100 = arith.divf %98, %99 : vector<1x256xf32>
    %c0_32 = arith.constant 0 : index
    %c0_33 = arith.constant 0 : index
    %101 = vector.load %arg6[%c0_32, %c0_33] : memref<1x256xf32, #tpu.memory_space<vmem>>, vector<1x256xf32>
    tpu.vector_store %arg6[%c0_32, %c0_33], %100 {strides = array<i32>} : memref<1x256xf32, #tpu.memory_space<vmem>>, vector<1x256xf32>,
    return
  }
  func.func @transform_0(%arg0: i32) -> (i32, i32) {
    %c0_i32 = arith.constant 0 : i32
    %c0_i32_0 = arith.constant 0 : i32
    return %c0_i32, %arg0 : i32, i32
  }
  func.func @transform_1(%arg0: i32) -> (i32, i32) {
    %c0_i32 = arith.constant 0 : i32
    %c0_i32_0 = arith.constant 0 : i32
    %c0_i32_1 = arith.constant 0 : i32
    return %c0_i32, %c0_i32_0 : i32, i32
  }
  func.func @transform_2(%arg0: i32) -> i32 {
    %c0_i32 = arith.constant 0 : i32
    %c0_i32_0 = arith.constant 0 : i32
    return %c0_i32 : i32
  }
  func.func @transform_3(%arg0: i32) -> i32 {
    %c0_i32 = arith.constant 0 : i32
    %c0_i32_0 = arith.constant 0 : i32
    return %c0_i32 : i32
  }
  func.func @transform_4(%arg0: i32) -> i32 {
    %c0_i32 = arith.constant 0 : i32
    %c0_i32_0 = arith.constant 0 : i32
    return %c0_i32 : i32
  }
  func.func @transform_5(%arg0: i32) -> (i32, i32) {
    %c0_i32 = arith.constant 0 : i32
    %c0_i32_0 = arith.constant 0 : i32
    return %c0_i32, %arg0 : i32, i32
  }
}

</mosaic_0001>

<bundles_post_ra>
// kernel: tpu_custom_call.1
= control target key start
LH: loop header
LB: loop body
LE: loop exit
PB: predicated region body
PF: predicated region fallthrough
CT: control target
= control target key end

     0   :  { %s1107_s0 = inlined_call_operand.hbm [shape: f32[4,1024], index: 0, kind: input, shape index: {}]   ;;  %s1108_s1 = inlined_call_operand.vmem [shape: f32[4,3], index: 1, kind: input, shape index: {}]   ;;  %s1109_s2 = inlined_call_operand.vmem [shape: f32[3], index: 2, kind: input, shape index: {}]   ;;  %s1110_s3 = inlined_call_operand.vmem [shape: f32[3], index: 3, kind: input, shape index: {}]   ;;  %s1111_s4 = inlined_call_operand.<no memory space> [shape: f32[1], index: 4, kind: input, shape index: {}]   ;;  %s1112_s5 = inlined_call_operand.hbm [shape: f32[1,1024], index: 5, kind: output, shape index: {}]  }
   0x1   :  { %10 = sst [smem:[#allocation2]] %s1111_s4 }
   0x2   :  { %11 = vsyncpa [#allocation4], 0 }
   0x3   :  { %13 = vsyncpa [#allocation4 + $0x1], 0 }
   0x4   :  { %14 = vsyncpa [#allocation6], 0 }
   0x5   :  { %15 = vsyncpa [#allocation9], 0 }
   0x6   :  { %16 = vsyncpa [#allocation5], 0 }
   0x7   :  { %18 = vsyncpa [#allocation5 + $0x1], 0  ;;  %s883_s20 = smov 0   ;;  %s885_s21 = smov 0  }
   0x8   :  { %s887_s22 = smov 0   ;;  %s889_s23 = smov 0  }
   0x9 LB: > { %s904_s4 = sadd.s32 4294967295, %s842_s23   ;;  %s549_s24 = sadd.s32 4294967294, %s842_s23   ;;  %s842_s23 = sphi %s889_s23, %s1133_s23   ;;  %s838_s22 = sphi %s887_s22, %s1132_s22   ;;  %s834_s21 = sphi %s885_s21, %s1131_s21   ;;  %s830_s20 = sphi %s883_s20, %s1130_s20  }
   0xa   : > { %p44_p0 = scmp.ne.s32.totalorder %s834_s21, %s830_s20  ;;  %p1113_p1 = scmp.eq.s32.totalorder %s904_s4, 0 }
   0xb   : > { %p158_p3 = scmp.eq.s32.totalorder %s549_s24, 3  ;;  %p550_p5 = scmp.ge.s32.totalorder %s842_s23, 1 }
   0xc   : > { %p913_p4 = por %p1113_p1, %p44_p0  ;;  %p165_p7 = scmp.lt.s32.totalorder %s842_s23, 5 }
   0xd   : > { %p918_p6 = por %p158_p3, %p44_p0  ;;  %s189_s29 = sshll.u32 %s1109_s2, 4  ;;  %s190_s29 = int_to_ptr.vmem [resolvable:$true] %s189_s29 }
   0xe   : > { %s1116_s25 = scalar_select %p913_p4, 1, 0 }
   0xf   : > { %s1117_s26 = scalar_select %p918_p6, 1, 0 }
  0x10   : > { %p926_p8 = pnand %p550_p5, %p165_p7  ;;  %s178_s8 = sshll.u32 %s1108_s1, 4  ;;  %s179_s8 = int_to_ptr.vmem [resolvable:$true] %s178_s8 }
  0x11   : > { %s200_s12 = sshll.u32 %s1110_s3, 4  ;;  %s693_s13 = scalar_lea.vmem %s190_s29, 16  ;;  %s944_s12 = int_to_ptr.vmem [resolvable:$true] %s200_s12 }
  0x12   : > { %s1118_s30 = scalar_select %p926_p8, 1, 0 }
  0x13   : > { %p615_p9 = pneg %p926_p8  ;;  %p694_p11 = scmp.ne.s32.totalorder %s190_s29, %s693_s13 }
  0x14   : > { %p701_p3 = scmp.lt.s32.totalorder %s190_s29, %s190_s29  ;;  %p702_p5 = scmp.lt.s32.totalorder %s693_s13, %s693_s13 }
  0x15   : > { %p937_p10 = pnand %p615_p9, %p1113_p1 }
  0x16   : > { %p703_p7 = por %p702_p5, %p701_p3 }
  0x17   : > { %p695_p12 = pneg %p937_p10 }
  0x19   : > { %p696_p13 = pnand %p695_p12, %p694_p11 }
  0x1b   : > { %p697_p0 = pneg %p696_p13 }
  0x1d   : > { %p704_p9 = pnand %p703_p7, %p697_p0 }
  0x1f   : > { %707 = shalt.err (!%p704_p9)
}
  0x20   : > { %s844_s14 = smov [#allocation8]   ;;  %s708_s15 = scalar_lea.vmem %s179_s8, 64 }
  0x21   : > { %621 = dma.vmem_to_smem (!%p937_p10), %s190_s29, 16, %s844_s14, [#allocation9]  }
  0x22   : > { %p709_p1 = scmp.ne.s32.totalorder %s179_s8, %s708_s15  ;;  %p716_p4 = scmp.lt.s32.totalorder %s179_s8, %s179_s8 }
  0x23   : > { %p717_p8 = scmp.lt.s32.totalorder %s708_s15, %s708_s15 }
  0x24   : > { %p711_p2 = pnand %p709_p1, %p695_p12 }
  0x25   : > { %p718_p11 = por %p717_p8, %p716_p4 }
  0x26   : > { %p712_p6 = pneg %p711_p2 }
  0x28   : > { %p719_p13 = pnand %p718_p11, %p712_p6 }
  0x2a   : > { %722 = shalt.err (!%p719_p13)
}
  0x2b   : > { %s845_s16 = smov [#allocation7]   ;;  %s723_s17 = scalar_lea.vmem %s944_s12, 16 }
  0x2c   : > { %618 = dma.vmem_to_smem (!%p937_p10), %s179_s8, 64, %s845_s16, [#allocation6]  }
  0x2d   : > { %p724_p0 = scmp.ne.s32.totalorder %s944_s12, %s723_s17  ;;  %p731_p2 = scmp.lt.s32.totalorder %s944_s12, %s944_s12 }
  0x2e   : > { %p732_p5 = scmp.lt.s32.totalorder %s723_s17, %s723_s17 }
  0x2f   : > { %p726_p3 = pnand %p724_p0, %p695_p12 }
  0x30   : > { %p733_p4 = por %p732_p5, %p731_p2 }
  0x31   : > { %p727_p1 = pneg %p726_p3 }
  0x33   : > { %p734_p6 = pnand %p733_p4, %p727_p1 }
  0x35   : > { %737 = shalt.err (!%p734_p6)
}
  0x36   : > { %s846_s18 = smov [#allocation10]   ;;  %s969_s19 = sadd.s32 1, %s842_s23  }
  0x37   : > { %624 = dma.vmem_to_smem (!%p937_p10), %s944_s12, 16, %s846_s18, [#allocation9]  }
  0x38   : > { %s28_s24 = ssub.s32 %s842_s23, %s969_s19  ;;  %s31_s27 = sadd.s32 1, %s838_s22 }
  0x39   : > { %p29_p8 = scmp.eq.s32.totalorder %s28_s24, 0  ;;  %p38_p12 = scmp.ne.s32.totalorder %s838_s22, %s834_s21 }
  0x3a   : > { %p39_p7 = scmp.eq.s32.totalorder %s842_s23, 0  ;;  %p636_p9 = scmp.lt.s32.totalorder %s842_s23, 4 }
  0x3b   : > { %s979_s28 = scalar_select %p29_p8, %s838_s22, %s31_s27  }
  0x3c   : > { %p40_p11 = por %p39_p7, %p38_p12  ;;  %p1120_p13 = scmp.eq.s32.totalorder %s904_s4, 3 }
  0x3d   : > { %s214_s6 = sand.u32 1, %s838_s22   ;;  %s597_s7 = sshll.u32 %s842_s23, 7 }
  0x3e   : > { %p983_p0 = por %p1120_p13, %p38_p12  ;;  %s555_s8 = sshll.u32 %s214_s6, 3 }
  0x3f   : > { %s992_s11 = scalar_lea.hbm %s1107_s0, %s597_s7  ;;  %s218_s12 = scalar_lea.vmem [#allocation3], %s555_s8 }
  0x40   : > { %s226_s13 = sshll.u32 %s218_s12, 4  ;;  %p994_p10 = pnand %p636_p9, %p40_p11  ;;  %s998_s13 = int_to_ptr.vmem [resolvable:$true] %s226_s13 }
  0x41   : > { %s215_s15 = scalar_lea.sflag [#allocation4], %s214_s6  ;;  %s738_s16 = scalar_lea.hbm %s992_s11, 128 }
  0x42   : > { %p739_p3 = scmp.ne.s32.totalorder %s992_s11, %s738_s16  ;;  %p740_p1 = pneg %p994_p10 }
  0x43   : > { %s743_s24 = scalar_lea.hbm %s1107_s0, 512  ;;  %p744_p4 = scmp.lt.u32.totalorder %s992_s11, %s1107_s0 }
  0x44   : > { %p741_p2 = pnand %p740_p1, %p739_p3  ;;  %p745_p6 = scmp.lt.u32.totalorder %s743_s24, %s738_s16 }
  0x45   : > { %p747_p12 = scmp.lt.u32.totalorder %s738_s16, %s992_s11 }
  0x46   : > { %p742_p5 = pneg %p741_p2  ;;  %p746_p8 = por %p745_p6, %p744_p4 }
  0x48   : > { %p748_p7 = por %p747_p12, %p746_p8 }
  0x4a   : > { %p749_p9 = pnand %p748_p7, %p742_p5 }
  0x4c   : > { %752 = shalt.err (!%p749_p9)
}
  0x4d   : > { %s753_s6 = scalar_lea.vmem %s998_s13, 128  ;;  %s847_s8 = smov [#allocation3]  }
  0x4e   : > { %p754_p11 = scmp.ne.s32.totalorder %s998_s13, %s753_s6  ;;  %s758_s9 = sshll.u32 %s847_s8, 4  ;;  %s759_s9 = int_to_ptr.vmem [resolvable:$false] %s758_s9 }
  0x4f   : > { %s760_s10 = scalar_lea.vmem %s759_s9, 256  ;;  %p761_p2 = scmp.lt.s32.totalorder %s998_s13, %s759_s9 }
  0x50   : > { %p756_p13 = pnand %p754_p11, %p740_p1  ;;  %p762_p4 = scmp.lt.s32.totalorder %s760_s10, %s753_s6 }
  0x52   : > { %p757_p3 = pneg %p756_p13  ;;  %p763_p6 = por %p762_p4, %p761_p2 }
  0x54   : > { %p764_p8 = pnand %p763_p6, %p757_p3 }
  0x56   : > { %767 = shalt.err (!%p764_p8)
}
  0x57   : > { %628 = dma.hbm_to_vmem [thread:$0]  (!%p994_p10), %s992_s11, 128, %s998_s13, %s215_s15  }
  0x58   : > { %p1123_p5 = scmp.ne.s32.totalorder %s1118_s30, 0 }
  0x59   : > { %s1028_s12 = sand.u32 (!%p1123_p5), 1, %s834_s21   ;;  %p1124_p1 = scmp.ne.s32.totalorder (!%p1123_p5), %s1116_s25, 0 }
  0x5a   : > { %235 = sbr.rel (%p1123_p5) target bundleno = 207 (0xcf), region = 40  ;;  %s559_s16 = sshll.u32 (!%p1123_p5), %s1028_s12, 3 }
  0x5b   : > { %s238_s17 = scalar_lea.sflag (!%p1123_p5), [#allocation4], %s1028_s12  ;;  %s241_s18 = scalar_lea.vmem (!%p1123_p5), [#allocation3], %s559_s16 }
  0x61   : > { %813 = dma.done.wait (%p1124_p1), %s238_s17, 128  }
  0x62   : > { %815 = vsyncadd (%p1124_p1), %s238_s17, 4294967168  ;;  %p1125_p12 = scmp.eq.s32.totalorder %s904_s4, 0 }
  0x64   : > { %817 = dma.done.wait (%p1125_p12), [#allocation6], 64   ;;  %p1126_p10 = pmov %p1125_p12 }
  0x66   : > { %819 = vsyncadd (%p1126_p10), [#allocation6], 4294967232  ;;  %p1127_p7 = pmov %p1126_p10 }
  0x68   : > { %821 = dma.done.wait (%p1127_p7), [#allocation9], 32   ;;  %p1128_p9 = pmov %p1127_p7 }
  0x6a   : > { %823 = vsyncadd (%p1128_p9), [#allocation9], 4294967264 }
  0x6b   : > { %258 = sfence }
  0x6c   : > { %s286_s30 = sld [smem:[#allocation7]]  ;;  %s571_s15 = sld [smem:[#allocation7 + $0x1]]  ;;  %v283_v0 = vld [vmem:[%s241_s18] sm:$0xff] }
  0x6d   : > { %s564_s11 = sld [smem:[#allocation7 + $0x80]]  ;;  %s572_s25 = sld [smem:[#allocation7 + $0x81]] }
  0x6e   : > { %s566_s13 = sld [smem:[#allocation7 + $0x100]]  ;;  %s574_s24 = sld [smem:[#allocation7 + $0x101]] }
  0x6f   : > { %s568_s14 = sld [smem:[#allocation7 + $0x180]]  ;;  %s576_s7 = sld [smem:[#allocation7 + $0x181]] }
  0x70   : > { %s1044_s27 = sld [smem:[#allocation8]]  ;;  %s1046_s6 = sld [smem:[#allocation7 + $0x2]] }
  0x71   : > { %s1048_s8 = sld [smem:[#allocation7 + $0x82]]  ;;  %s1052_s16 = sld [smem:[#allocation8 + $0x1]] }
  0x72   : > { %v287_v1 = vstv %s286_s30  ;;  %s1050_s9 = sld [smem:[#allocation7 + $0x102]]  ;;  %v327_v9 = vstv %s571_s15  ;;  %s316_s18 = sld [smem:[#allocation10]] }
  0x73   : > { %v290_v2 = vstv %s564_s11  ;;  %v288_v4 = vmul.f32 %v287_v1, %v283_v0  ;;  %s586_s10 = sld [smem:[#allocation7 + $0x182]]  ;;  %v330_v12 = vstv %s572_s25  ;;  %v328_v13 = vmul.f32 %v327_v9, %v283_v0  ;;  %s284_s30 = sld [smem:[#allocation2]] }
  0x74   : > { %v298_v3 = vstv %s566_s13  ;;  %v291_v5 = vmul.f32 %v290_v2, %v283_v0  ;;  %v331_v14 = vmul.f32 %v330_v12, %v283_v0  ;;  %v338_v15 = vstv %s574_s24  ;;  %s588_s17 = sld [smem:[#allocation8 + $0x2]]  ;;  %s579_s11 = sld [smem:[#allocation10 + $0x1]] }
  0x75   : > { %v299_v6 = vmul.f32 %v298_v3, %v283_v0  ;;  %v306_v7 = vstv %s568_s14  ;;  %v346_v16 = vstv %s576_s7  ;;  %v339_v19 = vmul.f32 %v338_v15, %v283_v0  ;;  %s589_s13 = sld [smem:[#allocation10 + $0x2]]  ;;  %s563_s14 = sshll.u32 %s1028_s12, 1 }
  0x76   : > { %v307_v8 = vmul.f32 %v306_v7, %v283_v0  ;;  %v565_v10 = vrot.slane %v291_v5, 9  ;;  %v347_v20 = vmul.f32 %v346_v16, %v283_v0  ;;  %v314_v21 = vstv %s1044_s27  ;;  %s280_s15 = scalar_lea.vmem [#allocation11], %s563_s14  ;;  %s598_s24 = sshll.u32 %s904_s4, 5 }
  0x77   : > { %v567_v11 = vrot.slane %v299_v6, 10  ;;  %v573_v22 = vrot.slane %v331_v14, 9  ;;  %v367_v23 = vstv %s1046_s6  ;;  %v370_v24 = vstv %s1048_s8  ;;  %s448_s25 = sshll.u32 %s280_s15, 4  ;;  %s1066_s6 = scalar_lea.hbm %s1112_s5, %s598_s24  ;;  %s1061_s25 = int_to_ptr.vmem [resolvable:$true] %s448_s25 }
  0x78   : > { %v296_v17 = vadd.f32 %v565_v10, %v288_v4  ;;  %v569_v18 = vrot.slane %v307_v8, 11  ;;  %v575_v26 = vrot.slane %v339_v19, 10  ;;  %v577_v27 = vrot.slane %v347_v20, 11  ;;  %s434_s8 = scalar_lea.sflag [#allocation5], %s1028_s12  ;;  %s849_s4 = smov [#allocation11]  }
  0x79   : > { %v368_v28 = vmul.f32 %v367_v23, %v283_v0  ;;  %v336_v29 = vadd.f32 %v573_v22, %v328_v13  ;;  %v371_v30 = vmul.f32 %v370_v24, %v283_v0  ;;  %v378_v31 = vstv %s1050_s9  ;;  %s768_s9 = scalar_lea.vmem %s1061_s25, 32 }
  0x7a   : > { %v304_v25 = vadd.f32 %v567_v11, %v296_v17  ;;  %v386_v32 = vstv %s586_s10  ;;  %v379_v34 = vmul.f32 %v378_v31, %v283_v0  ;;  %v354_v39 = vstv %s1052_s16  ;;  %p769_p11 = scmp.ne.s32.totalorder %s1061_s25, %s768_s9  ;;  %s772_s10 = sshll.u32 %s849_s4, 4  ;;  %s773_s10 = int_to_ptr.vmem [resolvable:$false] %s772_s10 }
  0x7b   : > { %v387_v35 = vmul.f32 %v386_v32, %v283_v0  ;;  %v344_v36 = vadd.f32 %v575_v26, %v336_v29  ;;  %v583_v37 = vrot.slane %v371_v30, 9  ;;  %v394_v47 = vstv %s588_s17  ;;  %s774_s16 = scalar_lea.vmem %s773_s10, 64  ;;  %p775_p2 = scmp.lt.s32.totalorder %s1061_s25, %s773_s10 }
  0x7c   : > { %v312_v33 = vadd.f32 %v569_v18, %v304_v25  ;;  %v585_v40 = vrot.slane %v379_v34, 10  ;;  %v323_v58 = vstv %s316_s18  ;;  %v285_v60 = vstv %s284_s30  ;;  %p770_p13 = pnand %p769_p11, %p983_p0  ;;  %p776_p4 = scmp.lt.s32.totalorder %s774_s16, %s768_s9 }
  0x7d   : > { %v352_v41 = vadd.f32 %v577_v27, %v344_v36  ;;  %v376_v42 = vadd.f32 %v583_v37, %v368_v28  ;;  %v587_v43 = vrot.slane %v387_v35, 11  ;;  %v363_v62 = vstv %s579_s11 }
  0x7e   : > { %v315_v38 = vadd.f32 %v314_v21, %v312_v33  ;;  %v403_v2 = vstv %s589_s13  ;;  %v848_v10 = vmov 1966171168   ;;  %v416_v12 = vlaneseq  ;;  %p771_p3 = pneg %p770_p13  ;;  %p777_p6 = por %p776_p4, %p775_p2 }
  0x7f   : > { %v355_v45 = vadd.f32 %v354_v39, %v352_v41  ;;  %v384_v46 = vadd.f32 %v585_v40, %v376_v42  ;;  %v414_v11 = vunpack.c.l.s4 %v848_v10 }
  0x80   : > { %v570_v44 = vmul.f32 -1.442695, %v315_v38  ;;  %v417_v14 = vshrl.u32 %v416_v12, 7  ;;  %vm430_vm0 = vcmp.lt.s32.totalorder %v416_v12, 256  ;;  %p778_p8 = pnand %p777_p6, %p771_p3 }
  0x81   : > { %v580_v48 = vmul.f32 -1.442695, %v355_v45  ;;  %v392_v49 = vadd.f32 %v587_v43, %v384_v46  ;;  %v415_v13 = vunpack.c.0.s8 %v414_v11 }
  0x82   : > { %677 = vpow2.f32 %v570_v44 }
  0x83   : > { %679 = vpow2.f32 %v580_v48  ;;  %v395_v50 = vadd.f32 %v394_v47, %v392_v49  ;;  %v418_v15 = vsub.s32 %v415_v13, %v417_v14 }
  0x85   : > { %v590_v51 = vmul.f32 -1.442695, %v395_v50 }
  0x87   : > { %681 = vpow2.f32 %v590_v51 }
  0x8c   : > { %v678_v52 = vpop.eup %677 }
  0x8d   : > { %v320_v53 = vadd.f32 1.0, %v678_v52  ;;  %v680_v54 = vpop.eup %679 }
  0x8e   : > { %v360_v55 = vadd.f32 1.0, %v680_v54 }
  0x8f   : > { %683 = vrcp.f32 %v320_v53 }
  0x90   : > { %685 = vrcp.f32 %v360_v55 }
  0x91   : > { %v682_v56 = vpop.eup %681 }
  0x92   : > { %v400_v57 = vadd.f32 1.0, %v682_v56 }
  0x94   : > { %687 = vrcp.f32 %v400_v57 }
  0x99   : > { %v684_v59 = vpop.eup %683 }
  0x9a   : > { %v324_v61 = vmul.f32 %v684_v59, %v323_v58  ;;  %v686_v63 = vpop.eup %685 }
  0x9b   : > { %v364_v1 = vmul.f32 %v686_v63, %v363_v62 }
  0x9c   : > { %v325_v0 = vadd.f32 %v324_v61, %v285_v60 }
  0x9e   : > { %v365_v3 = vadd.f32 %v364_v1, %v325_v0  ;;  %v688_v4 = vpop.eup %687 }
  0x9f   : > { %v404_v5 = vmul.f32 %v688_v4, %v403_v2 }
  0xa1   : > { %v405_v6 = vadd.f32 %v404_v5, %v365_v3 }
  0xa3   : > { %v591_v7 = vmul.f32 -1.442695, %v405_v6 }
  0xa5   : > { %689 = vpow2.f32 %v591_v7 }
  0xaf   : > { %v690_v8 = vpop.eup %689 }
  0xb0   : > { %v409_v9 = vadd.f32 1.0, %v690_v8 }
  0xb2   : > { %691 = vrcp.f32 %v409_v9 }
  0xbc   : > { %v692_v16 = vpop.eup %691 }
  0xbd   : > { %v419_v17 = vrot.slane %v692_v16, %v418_v15 }
  0xbf   : > { %v426_v18 = vrot.slane %v419_v17, %v418_v15 }
  0xc1   : > { %432 = vst.msk [vmem:[%s280_s15] sm:$0x3] %vm430_vm0, %v426_v18 }
  0xc2   : > { %781 = shalt.err (!%p778_p8)
}
  0xc3   : > { %s782_s12 = scalar_lea.hbm %s1066_s6, 32  ;;  %s786_s30 = scalar_lea.hbm %s1112_s5, 128 }
  0xc4   : > { %p783_p5 = scmp.ne.s32.totalorder %s1066_s6, %s782_s12  ;;  %p787_p10 = scmp.lt.u32.totalorder %s1066_s6, %s1112_s5 }
  0xc5   : > { %p788_p7 = scmp.lt.u32.totalorder %s786_s30, %s782_s12  ;;  %p790_p11 = scmp.lt.u32.totalorder %s782_s12, %s1066_s6 }
  0xc6   : > { %p784_p1 = pnand %p783_p5, %p983_p0 }
  0xc7   : > { %p789_p9 = por %p788_p7, %p787_p10 }
  0xc8   : > { %p785_p12 = pneg %p784_p1 }
  0xc9   : > { %p791_p13 = por %p790_p11, %p789_p9 }
  0xcb   : > { %p792_p3 = pnand %p791_p13, %p785_p12 }
  0xcd   : > { %795 = shalt.err (!%p792_p3)
}
  0xce   : > { %613 = dma.vmem_to_hbm [thread:$0]  (%p983_p0), %s1061_s25, 32, %s1066_s6, %s434_s8  }
  0xcf PF: > { %p640_p2 = scmp.ge.s32.totalorder %s842_s23, 2  ;;  %s460_s14 = sand.u32 1, %s830_s20  }
  0xd0   : > { %p1129_p4 = scmp.ne.s32.totalorder %s1117_s26, 0  ;;  %s461_s15 = scalar_lea.sflag [#allocation5], %s460_s14 }
  0xd2   : > { %p630_p6 = pnand %p640_p2, %p1129_p4 }
  0xd4   : > { %825 = dma.done.wait (!%p630_p6), %s461_s15, 32  }
  0xd5   : > { %827 = vsyncadd (!%p630_p6), %s461_s15, 4294967264  ;;  %p21_p8 = scmp.ge.s32.totalorder %s969_s19, 6   ;;  %s1130_s20 = smov %s834_s21 }
  0xd6   : > { %s1131_s21 = smov %s838_s22  ;;  %s1132_s22 = smov %s979_s28 }
  0xd7   : > { %s1133_s23 = smov %s969_s19  ;;  %23 = sbr.rel (!%p21_p8) target bundleno = 9 (0x9), region = 98 }
  0xde   :  { %466 = vsyncpa [#allocation4], 1 }
  0xdf   :  { %468 = vsyncpa [#allocation4 + $0x1], 1 }
  0xe0   :  { %469 = vsyncpa [#allocation5], 1 }
  0xe1   :  { %471 = vsyncpa [#allocation5 + $0x1], 1 }
  0xe2   :  { %472 = vsyncpa [#allocation6], 1 }
  0xe3   :  { %474 = vsyncpa [#allocation6 + $0x1], 1 }
  0xe4   :  { %475 = vsyncpa [#allocation9], 1 }

</bundles_post_ra>
